<compile_context>
chip_gen: v7x
topology: tpu7x:2x2x1
jax: 0.10.0
libtpu: 0.0.40
codegen_flags: <defaults>
</compile_context>

<pallas_src>
import jax
import jax.numpy as jnp
from jax import lax
from jax.experimental import pallas as pl
from jax.experimental.pallas import tpu as pltpu


_SUBLANE = 8  # f32 sublane count; tap blocks / channel padding align to this


def _round_up(x, m):
    return (x + m - 1) // m * m


def _make_kernel(H, W, Nb, Cp, Cout, compute_dtype):
    L = H * W

    def kernel(x_ref, w1_ref, b1_ref, w2_ref, b2_ref, o_ref):
        # x_ref : (Nb, Cp, L)   flattened NCHW input (channels padded to Cp)
        # w1_ref: (Cp, 9*Cp)    conv1 weights, BN1 scale folded, compute_dtype
        # b1_ref: (Cp, 1)       folded BN1(+conv1 bias) offset, f32
        # w2_ref: (Cout, 9*Cp)  conv2 weights, BN2 scale folded, compute_dtype
        # b2_ref: (Cout, 1)     f32
        # o_ref : (Nb, Cout, L) f32
        zero = jnp.zeros((), compute_dtype)

        # ---- halo masks, hoisted: one (Cp, L) broadcast per tap ------------
        p = lax.broadcasted_iota(jnp.int32, (1, L), 1)   # flat position y*W+x
        col = p % W
        tap_masks = []
        for dy in (-1, 0, 1):
            for dx in (-1, 0, 1):
                m = None
                if dy == -1:
                    m = p >= W                       # needs row y-1 >= 0
                elif dy == 1:
                    m = p < (H - 1) * W              # needs row y+1 <= H-1
                if dx == -1:
                    mc = col >= 1                    # needs col x-1 >= 0
                    m = mc if m is None else (m & mc)
                elif dx == 1:
                    mc = col <= W - 2                # needs col x+1 <= W-1
                    m = mc if m is None else (m & mc)
                tap_masks.append(None if m is None
                                 else jnp.broadcast_to(m, (Cp, L)))

        def im2col(xb):
            # xb: (Cp, L) compute_dtype -> (9*Cp, L).
            # out[p] for tap (dy,dx) is xb[p + dy*W + dx] where valid, else 0;
            # pltpu.roll gives xb[(p + s) % L], the mask kills the wraps.
            # Row order (ky, kx, ci) matches the folded weight columns.
            taps = []
            t = 0
            for dy in (-1, 0, 1):
                for dx in (-1, 0, 1):
                    s = dy * W + dx
                    r = xb if s == 0 else pltpu.roll(xb, (-s) % L, 1)
                    m = tap_masks[t]
                    if m is not None:
                        r = jnp.where(m, r, zero)
                    taps.append(r)
                    t += 1
            return jnp.concatenate(taps, axis=0)     # (9*Cp, L), 8-row blocks

        # ---- conv1 (Cp -> Cp): one matmul (Cp, 9Cp) x (9Cp, Nb*L) ----------
        k1 = jnp.concatenate(
            [im2col(x_ref[b].astype(compute_dtype)) for b in range(Nb)],
            axis=-1)
        y1 = jnp.dot(w1_ref[...], k1,
                     preferred_element_type=jnp.float32) + b1_ref[...]
        y1 = jnp.maximum(y1, 0.0).astype(compute_dtype)        # (Cp, Nb*L)

        # ---- conv2 (Cp -> Cout) --------------------------------------------
        k2 = jnp.concatenate(
            [im2col(y1[:, b * L:(b + 1) * L]) for b in range(Nb)], axis=-1)
        y2 = jnp.dot(w2_ref[...], k2,
                     preferred_element_type=jnp.float32) + b2_ref[...]
        y2 = jnp.maximum(y2, 0.0)                               # (Cout, Nb*L)

        # Lane-dense stores: (Cout, L) slabs, L a multiple of 128.
        for b in range(Nb):
            o_ref[b] = y2[:, b * L:(b + 1) * L].astype(o_ref.dtype)

    return kernel


def _pick_nb(N, Cp, Cout, L, cbytes, budget_bytes=24 << 20, max_nb=64):
    """Largest batch block that fits a per-step VMEM budget while keeping
    >= 2 grid steps (pipelining + at least one step per TensorCore)."""
    per_img = L * (2 * 4 * Cp + 2 * 4 * Cout      # double-buffered in/out
                   + 2 * 9 * Cp * cbytes          # k1, k2
                   + Cp * (4 + cbytes))           # y1 (f32 + compute copy)
    cap = max(1, budget_bytes // max(per_img, 1))
    best = 1
    for nb in range(1, min(max_nb, N, cap) + 1):
        if N % nb:
            continue
        if N >= 2 and N // nb < 2:
            continue
        best = nb
    return best


def _fold_weights(w, s, cin_pad, cout_pad):
    """w: (3,3,Cin,Cout) HWIO, s: (Cout,) BN scale.
    Returns (cout_pad, 9*cin_pad) with wm[co, (ky*3+kx)*cin_pad + ci] =
    w[ky,kx,ci,co]*s[co]; padded rows/columns are zero."""
    kh, kw, cin, cout = w.shape
    wf = jnp.transpose(w * s[None, None, None, :], (3, 0, 1, 2))
    wf = jnp.pad(wf, ((0, cout_pad - cout), (0, 0), (0, 0), (0, cin_pad - cin)))
    return wf.reshape(cout_pad, kh * kw * cin_pad)


def d_convlayer_pallas(x_nchw, params, compute_dtype=jnp.bfloat16):
    """Runs D_ConvLayer. x_nchw: (N, Cin, H, W) f32. Returns (N, Cout, H, W)."""
    (w1, s1, b1, w2, s2, b2) = params          # w*: HWIO; s*/b*: (C,)
    N, Cin, H, W = x_nchw.shape
    Cout = w2.shape[-1]
    L = H * W
    Cp = _round_up(Cin, _SUBLANE)              # sublane-aligned tap blocks
    cbytes = jnp.dtype(compute_dtype).itemsize
    Nb = _pick_nb(N, Cp, Cout, L, cbytes)

    # BN scale folded into weights (cast to the MXU compute dtype); BN offset
    # (+conv bias) stays as an f32 per-channel bias added after the matmul.
    w1m = _fold_weights(w1, s1, Cp, Cp).astype(compute_dtype)     # (Cp, 9Cp)
    w2m = _fold_weights(w2, s2, Cp, Cout).astype(compute_dtype)   # (Cout, 9Cp)
    b1c = jnp.pad(b1, (0, Cp - Cin)).reshape(Cp, 1).astype(jnp.float32)
    b2c = b2.reshape(Cout, 1).astype(jnp.float32)

    # Free reshape NCHW -> (N, C, H*W); channel pad only if Cin % 8 != 0
    # (real-model channel counts are already multiples of 8).
    x_flat = x_nchw.reshape(N, Cin, L)
    if Cp != Cin:
        x_flat = jnp.pad(x_flat, ((0, 0), (0, Cp - Cin), (0, 0)))

    # Raise the scoped-VMEM limit (defaults 16/32/32 MiB on v5e/v6e/v7x);
    # capped at 48 MiB so it stays inside v7x's 64 MiB physical VMEM.
    per_step = Nb * L * (2 * 4 * Cp + 2 * 4 * Cout + 2 * 9 * Cp * cbytes
                         + Cp * (4 + cbytes))
    vmem_limit = int(min(48 << 20, max(32 << 20, 4 * per_step)))

    out_flat = pl.pallas_call(
        _make_kernel(H, W, Nb, Cp, Cout, compute_dtype),
        out_shape=jax.ShapeDtypeStruct((N, Cout, L), jnp.float32),
        grid_spec=pltpu.PrefetchScalarGridSpec(
            num_scalar_prefetch=0,
            grid=(N // Nb,),
            in_specs=[
                pl.BlockSpec((Nb, Cp, L), lambda n: (n, 0, 0)),
                pl.BlockSpec((Cp, 9 * Cp), lambda n: (0, 0)),
                pl.BlockSpec((Cp, 1), lambda n: (0, 0)),
                pl.BlockSpec((Cout, 9 * Cp), lambda n: (0, 0)),
                pl.BlockSpec((Cout, 1), lambda n: (0, 0)),
            ],
            out_specs=pl.BlockSpec((Nb, Cout, L), lambda n: (n, 0, 0)),
        ),
        compiler_params=pltpu.CompilerParams(
            dimension_semantics=("parallel",),
            vmem_limit_bytes=vmem_limit),
    )(x_flat, w1m, b1c, w2m, b2c)

    # Free reshape back to NCHW.
    return out_flat.reshape(N, Cout, H, W)


def make_params(in_ch, out_ch):
    """Deterministic synthetic parameters; eval-mode BN (+conv bias) folded."""
    key = jax.random.PRNGKey(0)
    k1, k2 = jax.random.split(key)
    eps = 1e-5

    # conv1: in_ch -> in_ch, HWIO layout
    w1 = jax.random.normal(k1, (3, 3, in_ch, in_ch), jnp.float32) * 0.1
    cb1 = jnp.linspace(-0.1, 0.1, in_ch, dtype=jnp.float32)
    gamma1 = 1.0 + 0.05 * jnp.arange(in_ch, dtype=jnp.float32)
    beta1 = 0.02 * jnp.arange(in_ch, dtype=jnp.float32)
    mean1 = 0.01 * jnp.arange(in_ch, dtype=jnp.float32)
    var1 = 1.0 + 0.1 * jnp.arange(in_ch, dtype=jnp.float32)
    s1 = gamma1 / jnp.sqrt(var1 + eps)
    b1 = beta1 + s1 * (cb1 - mean1)

    # conv2: in_ch -> out_ch
    w2 = jax.random.normal(k2, (3, 3, in_ch, out_ch), jnp.float32) * 0.1
    cb2 = jnp.linspace(-0.05, 0.05, out_ch, dtype=jnp.float32)
    gamma2 = 1.0 - 0.02 * jnp.arange(out_ch, dtype=jnp.float32)
    beta2 = -0.01 * jnp.arange(out_ch, dtype=jnp.float32)
    mean2 = 0.005 * jnp.arange(out_ch, dtype=jnp.float32)
    var2 = 1.0 + 0.05 * jnp.arange(out_ch, dtype=jnp.float32)
    s2 = gamma2 / jnp.sqrt(var2 + eps)
    b2 = beta2 + s2 * (cb2 - mean2)

    return (w1, s1, b1, w2, s2, b2)


def _reference(x_nchw, params):
    """Pure-JAX reference (lax.conv) for correctness checking."""
    (w1, s1, b1, w2, s2, b2) = params
    x = jnp.transpose(x_nchw, (0, 2, 3, 1))  # NHWC
    dn = ('NHWC', 'HWIO', 'NHWC')
    y = lax.conv_general_dilated(x, w1, (1, 1), 'SAME', dimension_numbers=dn,
                                 precision=lax.Precision.HIGHEST)
    y = jnp.maximum(y * s1 + b1, 0.0)
    y = lax.conv_general_dilated(y, w2, (1, 1), 'SAME', dimension_numbers=dn,
                                 precision=lax.Precision.HIGHEST)
    y = jnp.maximum(y * s2 + b2, 0.0)
    return jnp.transpose(y, (0, 3, 1, 2))


if __name__ == "__main__":
    N, in_ch, out_ch, H, W = 2, 4, 8, 16, 16
    key = jax.random.PRNGKey(0)
    x = jax.random.normal(key, (N, in_ch, H, W), jnp.float32)

    params = make_params(in_ch, out_ch)
    ref = _reference(x, params)

    # f32-operand path: bit-tight check of layout / roll-im2col / weight fold.
    out_f32 = jax.block_until_ready(
        d_convlayer_pallas(x, params, compute_dtype=jnp.float32))
    assert out_f32.shape == (N, out_ch, H, W)
    assert jnp.allclose(out_f32, ref, atol=1e-3, rtol=1e-3), \
        float(jnp.max(jnp.abs(out_f32 - ref)))

    # Default bf16-MXU path (production): bf16 operands, f32 accumulation.
    out = jax.block_until_ready(d_convlayer_pallas(x, params))
    assert out.shape == (N, out_ch, H, W)
    assert jnp.allclose(out, ref, atol=2e-2, rtol=2e-2), \
        float(jnp.max(jnp.abs(out - ref)))

    print("KERNEL_OK")
</pallas_src>

<mosaic_0001>
module attributes {stable_mosaic.version = 11 : i64} {
  func.func @kernel(%arg0: i32, %arg1: memref<1x8x256xf32, #tpu.memory_space<vmem>>, %arg2: memref<8x72xf32, #tpu.memory_space<vmem>>, %arg3: memref<8x1xf32, #tpu.memory_space<vmem>>, %arg4: memref<8x72xf32, #tpu.memory_space<vmem>>, %arg5: memref<8x1xf32, #tpu.memory_space<vmem>>, %arg6: memref<1x8x256xf32, #tpu.memory_space<vmem>>) attributes {dimension_semantics = [#tpu.dimension_semantics<parallel>], iteration_bounds = array<i64: 2>, scalar_prefetch = 0 : i64, scratch_operands = 0 : i64, tpu.core_type = #tpu.core_type<tc>, window_params = [{transform_indices = @transform_0, window_bounds = array<i64: 1, 8, 256>}, {pipeline_mode = #tpu.pipeline_mode<synchronous>, transform_indices = @transform_1, window_bounds = array<i64: 8, 72>}, {pipeline_mode = #tpu.pipeline_mode<synchronous>, transform_indices = @transform_2, window_bounds = array<i64: 8, 1>}, {pipeline_mode = #tpu.pipeline_mode<synchronous>, transform_indices = @transform_3, window_bounds = array<i64: 8, 72>}, {pipeline_mode = #tpu.pipeline_mode<synchronous>, transform_indices = @transform_4, window_bounds = array<i64: 8, 1>}, {transform_indices = @transform_5, window_bounds = array<i64: 1, 8, 256>}]} {
    %0 = tpu.iota {dimensions = array<i32: 1>} : vector<1x256xi32>
    %c16_i32 = arith.constant 16 : i32
    %c0_i32 = arith.constant 0 : i32
    %1 = arith.cmpi eq, %c16_i32, %c0_i32 : i32
    %c1_i32 = arith.constant 1 : i32
    %2 = arith.select %1, %c1_i32, %c16_i32 : i32
    %3 = vector.broadcast %2 : i32 to vector<1x256xi32>
    %4 = arith.remsi %0, %3 : vector<1x256xi32>
    %c0_i32_0 = arith.constant 0 : i32
    %5 = vector.broadcast %c0_i32_0 : i32 to vector<1x256xi32>
    %6 = arith.cmpi ne, %4, %5 : vector<1x256xi32>
    %c0_i32_1 = arith.constant 0 : i32
    %7 = vector.broadcast %c0_i32_1 : i32 to vector<1x256xi32>
    %8 = arith.cmpi slt, %4, %7 : vector<1x256xi32>
    %c0_i32_2 = arith.constant 0 : i32
    %9 = arith.cmpi slt, %2, %c0_i32_2 : i32
    %10 = vector.broadcast %9 : i1 to vector<1x256xi1>
    %11 = vector.broadcast %10 : vector<1x256xi1> to vector<1x256xi1>
    %12 = arith.xori %8, %11 : vector<1x256xi1>
    %13 = arith.andi %12, %6 : vector<1x256xi1>
    %14 = vector.broadcast %2 : i32 to vector<1x256xi32>
    %15 = arith.addi %4, %14 : vector<1x256xi32>
    %16 = arith.select %13, %15, %4 : vector<1x256xi1>, vector<1x256xi32>
    %c16_i32_3 = arith.constant 16 : i32
    %17 = vector.broadcast %c16_i32_3 : i32 to vector<1x256xi32>
    %18 = arith.cmpi sge, %0, %17 : vector<1x256xi32>
    %c1_i32_4 = arith.constant 1 : i32
    %19 = vector.broadcast %c1_i32_4 : i32 to vector<1x256xi32>
    %20 = arith.cmpi sge, %16, %19 : vector<1x256xi32>
    %21 = arith.andi %18, %20 : vector<1x256xi1>
    %22 = vector.shape_cast %21 : vector<1x256xi1> to vector<1x256xi1>
    %23 = vector.broadcast %22 : vector<1x256xi1> to vector<8x256xi1>
    %c16_i32_5 = arith.constant 16 : i32
    %24 = vector.broadcast %c16_i32_5 : i32 to vector<1x256xi32>
    %25 = arith.cmpi sge, %0, %24 : vector<1x256xi32>
    %26 = vector.shape_cast %25 : vector<1x256xi1> to vector<1x256xi1>
    %27 = vector.broadcast %26 : vector<1x256xi1> to vector<8x256xi1>
    %c16_i32_6 = arith.constant 16 : i32
    %28 = vector.broadcast %c16_i32_6 : i32 to vector<1x256xi32>
    %29 = arith.cmpi sge, %0, %28 : vector<1x256xi32>
    %c14_i32 = arith.constant 14 : i32
    %30 = vector.broadcast %c14_i32 : i32 to vector<1x256xi32>
    %31 = arith.cmpi sle, %16, %30 : vector<1x256xi32>
    %32 = arith.andi %29, %31 : vector<1x256xi1>
    %33 = vector.shape_cast %32 : vector<1x256xi1> to vector<1x256xi1>
    %34 = vector.broadcast %33 : vector<1x256xi1> to vector<8x256xi1>
    %c1_i32_7 = arith.constant 1 : i32
    %35 = vector.broadcast %c1_i32_7 : i32 to vector<1x256xi32>
    %36 = arith.cmpi sge, %16, %35 : vector<1x256xi32>
    %37 = vector.shape_cast %36 : vector<1x256xi1> to vector<1x256xi1>
    %38 = vector.broadcast %37 : vector<1x256xi1> to vector<8x256xi1>
    %c14_i32_8 = arith.constant 14 : i32
    %39 = vector.broadcast %c14_i32_8 : i32 to vector<1x256xi32>
    %40 = arith.cmpi sle, %16, %39 : vector<1x256xi32>
    %41 = vector.shape_cast %40 : vector<1x256xi1> to vector<1x256xi1>
    %42 = vector.broadcast %41 : vector<1x256xi1> to vector<8x256xi1>
    %c240_i32 = arith.constant 240 : i32
    %43 = vector.broadcast %c240_i32 : i32 to vector<1x256xi32>
    %44 = arith.cmpi slt, %0, %43 : vector<1x256xi32>
    %c1_i32_9 = arith.constant 1 : i32
    %45 = vector.broadcast %c1_i32_9 : i32 to vector<1x256xi32>
    %46 = arith.cmpi sge, %16, %45 : vector<1x256xi32>
    %47 = arith.andi %44, %46 : vector<1x256xi1>
    %48 = vector.shape_cast %47 : vector<1x256xi1> to vector<1x256xi1>
    %49 = vector.broadcast %48 : vector<1x256xi1> to vector<8x256xi1>
    %c240_i32_10 = arith.constant 240 : i32
    %50 = vector.broadcast %c240_i32_10 : i32 to vector<1x256xi32>
    %51 = arith.cmpi slt, %0, %50 : vector<1x256xi32>
    %52 = vector.shape_cast %51 : vector<1x256xi1> to vector<1x256xi1>
    %53 = vector.broadcast %52 : vector<1x256xi1> to vector<8x256xi1>
    %c240_i32_11 = arith.constant 240 : i32
    %54 = vector.broadcast %c240_i32_11 : i32 to vector<1x256xi32>
    %55 = arith.cmpi slt, %0, %54 : vector<1x256xi32>
    %c14_i32_12 = arith.constant 14 : i32
    %56 = vector.broadcast %c14_i32_12 : i32 to vector<1x256xi32>
    %57 = arith.cmpi sle, %16, %56 : vector<1x256xi32>
    %58 = arith.andi %55, %57 : vector<1x256xi1>
    %59 = vector.shape_cast %58 : vector<1x256xi1> to vector<1x256xi1>
    %60 = vector.broadcast %59 : vector<1x256xi1> to vector<8x256xi1>
    %c0 = arith.constant 0 : index
    %c0_13 = arith.constant 0 : index
    %c0_14 = arith.constant 0 : index
    %61 = vector.load %arg1[%c0, %c0_13, %c0_14] : memref<1x8x256xf32, #tpu.memory_space<vmem>>, vector<1x8x256xf32>
    %62 = vector.shape_cast %61 : vector<1x8x256xf32> to vector<8x256xf32>
    %c17_i32 = arith.constant 17 : i32
    %63 = tpu.dynamic_rotate %62 by %c17_i32 dim 1 : vector<8x256xf32>, i32 -> vector<8x256xf32>
    %cst = arith.constant 0.000000e+00 : f32
    %64 = vector.broadcast %cst : f32 to vector<8x256xf32>
    %65 = arith.select %23, %63, %64 : vector<8x256xi1>, vector<8x256xf32>
    %c16_i32_15 = arith.constant 16 : i32
    %66 = tpu.dynamic_rotate %62 by %c16_i32_15 dim 1 : vector<8x256xf32>, i32 -> vector<8x256xf32>
    %cst_16 = arith.constant 0.000000e+00 : f32
    %67 = vector.broadcast %cst_16 : f32 to vector<8x256xf32>
    %68 = arith.select %27, %66, %67 : vector<8x256xi1>, vector<8x256xf32>
    %c15_i32 = arith.constant 15 : i32
    %69 = tpu.dynamic_rotate %62 by %c15_i32 dim 1 : vector<8x256xf32>, i32 -> vector<8x256xf32>
    %cst_17 = arith.constant 0.000000e+00 : f32
    %70 = vector.broadcast %cst_17 : f32 to vector<8x256xf32>
    %71 = arith.select %34, %69, %70 : vector<8x256xi1>, vector<8x256xf32>
    %c1_i32_18 = arith.constant 1 : i32
    %72 = tpu.dynamic_rotate %62 by %c1_i32_18 dim 1 : vector<8x256xf32>, i32 -> vector<8x256xf32>
    %cst_19 = arith.constant 0.000000e+00 : f32
    %73 = vector.broadcast %cst_19 : f32 to vector<8x256xf32>
    %74 = arith.select %38, %72, %73 : vector<8x256xi1>, vector<8x256xf32>
    %c255_i32 = arith.constant 255 : i32
    %75 = tpu.dynamic_rotate %62 by %c255_i32 dim 1 : vector<8x256xf32>, i32 -> vector<8x256xf32>
    %cst_20 = arith.constant 0.000000e+00 : f32
    %76 = vector.broadcast %cst_20 : f32 to vector<8x256xf32>
    %77 = arith.select %42, %75, %76 : vector<8x256xi1>, vector<8x256xf32>
    %c241_i32 = arith.constant 241 : i32
    %78 = tpu.dynamic_rotate %62 by %c241_i32 dim 1 : vector<8x256xf32>, i32 -> vector<8x256xf32>
    %cst_21 = arith.constant 0.000000e+00 : f32
    %79 = vector.broadcast %cst_21 : f32 to vector<8x256xf32>
    %80 = arith.select %49, %78, %79 : vector<8x256xi1>, vector<8x256xf32>
    %c240_i32_22 = arith.constant 240 : i32
    %81 = tpu.dynamic_rotate %62 by %c240_i32_22 dim 1 : vector<8x256xf32>, i32 -> vector<8x256xf32>
    %cst_23 = arith.constant 0.000000e+00 : f32
    %82 = vector.broadcast %cst_23 : f32 to vector<8x256xf32>
    %83 = arith.select %53, %81, %82 : vector<8x256xi1>, vector<8x256xf32>
    %c239_i32 = arith.constant 239 : i32
    %84 = tpu.dynamic_rotate %62 by %c239_i32 dim 1 : vector<8x256xf32>, i32 -> vector<8x256xf32>
    %cst_24 = arith.constant 0.000000e+00 : f32
    %85 = vector.broadcast %cst_24 : f32 to vector<8x256xf32>
    %86 = arith.select %60, %84, %85 : vector<8x256xi1>, vector<8x256xf32>
    %87 = tpu.concatenate %65, %68, %71, %74, %62, %77, %80, %83, %86 in 0 : vector<8x256xf32>, vector<8x256xf32>, vector<8x256xf32>, vector<8x256xf32>, vector<8x256xf32>, vector<8x256xf32>, vector<8x256xf32>, vector<8x256xf32>, vector<8x256xf32> -> vector<72x256xf32>
    %c0_25 = arith.constant 0 : index
    %c0_26 = arith.constant 0 : index
    %88 = vector.load %arg2[%c0_25, %c0_26] : memref<8x72xf32, #tpu.memory_space<vmem>>, vector<8x72xf32>
    %cst_27 = arith.constant dense<0.000000e+00> : vector<8x256xf32>
    %89 = tpu.matmul %88, %87, %cst_27 {dimension_numbers = #tpu.dot_dimension_numbers<[1], [0], [0], [1], [0, 0, 1, 1], [], []>} : vector<8x72xf32>, vector<72x256xf32>, vector<8x256xf32> -> vector<8x256xf32>
    %c0_28 = arith.constant 0 : index
    %c0_29 = arith.constant 0 : index
    %90 = vector.load %arg3[%c0_28, %c0_29] : memref<8x1xf32, #tpu.memory_space<vmem>>, vector<8x1xf32>
    %91 = vector.broadcast %90 : vector<8x1xf32> to vector<8x256xf32>
    %92 = arith.addf %89, %91 : vector<8x256xf32>
    %cst_30 = arith.constant 0.000000e+00 : f32
    %93 = vector.broadcast %cst_30 : f32 to vector<8x256xf32>
    %94 = arith.maximumf %92, %93 : vector<8x256xf32>
    %c17_i32_31 = arith.constant 17 : i32
    %95 = tpu.dynamic_rotate %94 by %c17_i32_31 dim 1 : vector<8x256xf32>, i32 -> vector<8x256xf32>
    %cst_32 = arith.constant 0.000000e+00 : f32
    %96 = vector.broadcast %cst_32 : f32 to vector<8x256xf32>
    %97 = arith.select %23, %95, %96 : vector<8x256xi1>, vector<8x256xf32>
    %c16_i32_33 = arith.constant 16 : i32
    %98 = tpu.dynamic_rotate %94 by %c16_i32_33 dim 1 : vector<8x256xf32>, i32 -> vector<8x256xf32>
    %cst_34 = arith.constant 0.000000e+00 : f32
    %99 = vector.broadcast %cst_34 : f32 to vector<8x256xf32>
    %100 = arith.select %27, %98, %99 : vector<8x256xi1>, vector<8x256xf32>
    %c15_i32_35 = arith.constant 15 : i32
    %101 = tpu.dynamic_rotate %94 by %c15_i32_35 dim 1 : vector<8x256xf32>, i32 -> vector<8x256xf32>
    %cst_36 = arith.constant 0.000000e+00 : f32
    %102 = vector.broadcast %cst_36 : f32 to vector<8x256xf32>
    %103 = arith.select %34, %101, %102 : vector<8x256xi1>, vector<8x256xf32>
    %c1_i32_37 = arith.constant 1 : i32
    %104 = tpu.dynamic_rotate %94 by %c1_i32_37 dim 1 : vector<8x256xf32>, i32 -> vector<8x256xf32>
    %cst_38 = arith.constant 0.000000e+00 : f32
    %105 = vector.broadcast %cst_38 : f32 to vector<8x256xf32>
    %106 = arith.select %38, %104, %105 : vector<8x256xi1>, vector<8x256xf32>
    %c255_i32_39 = arith.constant 255 : i32
    %107 = tpu.dynamic_rotate %94 by %c255_i32_39 dim 1 : vector<8x256xf32>, i32 -> vector<8x256xf32>
    %cst_40 = arith.constant 0.000000e+00 : f32
    %108 = vector.broadcast %cst_40 : f32 to vector<8x256xf32>
    %109 = arith.select %42, %107, %108 : vector<8x256xi1>, vector<8x256xf32>
    %c241_i32_41 = arith.constant 241 : i32
    %110 = tpu.dynamic_rotate %94 by %c241_i32_41 dim 1 : vector<8x256xf32>, i32 -> vector<8x256xf32>
    %cst_42 = arith.constant 0.000000e+00 : f32
    %111 = vector.broadcast %cst_42 : f32 to vector<8x256xf32>
    %112 = arith.select %49, %110, %111 : vector<8x256xi1>, vector<8x256xf32>
    %c240_i32_43 = arith.constant 240 : i32
    %113 = tpu.dynamic_rotate %94 by %c240_i32_43 dim 1 : vector<8x256xf32>, i32 -> vector<8x256xf32>
    %cst_44 = arith.constant 0.000000e+00 : f32
    %114 = vector.broadcast %cst_44 : f32 to vector<8x256xf32>
    %115 = arith.select %53, %113, %114 : vector<8x256xi1>, vector<8x256xf32>
    %c239_i32_45 = arith.constant 239 : i32
    %116 = tpu.dynamic_rotate %94 by %c239_i32_45 dim 1 : vector<8x256xf32>, i32 -> vector<8x256xf32>
    %cst_46 = arith.constant 0.000000e+00 : f32
    %117 = vector.broadcast %cst_46 : f32 to vector<8x256xf32>
    %118 = arith.select %60, %116, %117 : vector<8x256xi1>, vector<8x256xf32>
    %119 = tpu.concatenate %97, %100, %103, %106, %94, %109, %112, %115, %118 in 0 : vector<8x256xf32>, vector<8x256xf32>, vector<8x256xf32>, vector<8x256xf32>, vector<8x256xf32>, vector<8x256xf32>, vector<8x256xf32>, vector<8x256xf32>, vector<8x256xf32> -> vector<72x256xf32>
    %c0_47 = arith.constant 0 : index
    %c0_48 = arith.constant 0 : index
    %120 = vector.load %arg4[%c0_47, %c0_48] : memref<8x72xf32, #tpu.memory_space<vmem>>, vector<8x72xf32>
    %cst_49 = arith.constant dense<0.000000e+00> : vector<8x256xf32>
    %121 = tpu.matmul %120, %119, %cst_49 {dimension_numbers = #tpu.dot_dimension_numbers<[1], [0], [0], [1], [0, 0, 1, 1], [], []>} : vector<8x72xf32>, vector<72x256xf32>, vector<8x256xf32> -> vector<8x256xf32>
    %c0_50 = arith.constant 0 : index
    %c0_51 = arith.constant 0 : index
    %122 = vector.load %arg5[%c0_50, %c0_51] : memref<8x1xf32, #tpu.memory_space<vmem>>, vector<8x1xf32>
    %123 = vector.broadcast %122 : vector<8x1xf32> to vector<8x256xf32>
    %124 = arith.addf %121, %123 : vector<8x256xf32>
    %cst_52 = arith.constant 0.000000e+00 : f32
    %125 = vector.broadcast %cst_52 : f32 to vector<8x256xf32>
    %126 = arith.maximumf %124, %125 : vector<8x256xf32>
    %c0_53 = arith.constant 0 : index
    %c0_54 = arith.constant 0 : index
    %c0_55 = arith.constant 0 : index
    %127 = vector.load %arg6[%c0_53, %c0_54, %c0_55] : memref<1x8x256xf32, #tpu.memory_space<vmem>>, vector<1x8x256xf32>
    %128 = vector.shape_cast %127 : vector<1x8x256xf32> to vector<8x256xf32>
    %129 = vector.shape_cast %126 : vector<8x256xf32> to vector<1x8x256xf32>
    tpu.vector_store %arg6[%c0_53, %c0_54, %c0_55], %129 {strides = array<i32>} : memref<1x8x256xf32, #tpu.memory_space<vmem>>, vector<1x8x256xf32>,
    return
  }
  func.func @transform_0(%arg0: i32) -> (i32, i32, i32) {
    %c0_i32 = arith.constant 0 : i32
    %c0_i32_0 = arith.constant 0 : i32
    %c0_i32_1 = arith.constant 0 : i32
    return %arg0, %c0_i32, %c0_i32_0 : i32, i32, i32
  }
  func.func @transform_1(%arg0: i32) -> (i32, i32) {
    %c0_i32 = arith.constant 0 : i32
    %c0_i32_0 = arith.constant 0 : i32
    %c0_i32_1 = arith.constant 0 : i32
    return %c0_i32, %c0_i32_0 : i32, i32
  }
  func.func @transform_2(%arg0: i32) -> (i32, i32) {
    %c0_i32 = arith.constant 0 : i32
    %c0_i32_0 = arith.constant 0 : i32
    %c0_i32_1 = arith.constant 0 : i32
    return %c0_i32, %c0_i32_0 : i32, i32
  }
  func.func @transform_3(%arg0: i32) -> (i32, i32) {
    %c0_i32 = arith.constant 0 : i32
    %c0_i32_0 = arith.constant 0 : i32
    %c0_i32_1 = arith.constant 0 : i32
    return %c0_i32, %c0_i32_0 : i32, i32
  }
  func.func @transform_4(%arg0: i32) -> (i32, i32) {
    %c0_i32 = arith.constant 0 : i32
    %c0_i32_0 = arith.constant 0 : i32
    %c0_i32_1 = arith.constant 0 : i32
    return %c0_i32, %c0_i32_0 : i32, i32
  }
  func.func @transform_5(%arg0: i32) -> (i32, i32, i32) {
    %c0_i32 = arith.constant 0 : i32
    %c0_i32_0 = arith.constant 0 : i32
    %c0_i32_1 = arith.constant 0 : i32
    return %arg0, %c0_i32, %c0_i32_0 : i32, i32, i32
  }
}

</mosaic_0001>

<bundles_post_ra>
// kernel: tpu_custom_call.1
= control target key start
LH: loop header
LB: loop body
LE: loop exit
PB: predicated region body
PF: predicated region fallthrough
CT: control target
= control target key end

     0   :  { %10 = vsyncpa [#allocation3], 0  ;;  %s1500_s0 = inlined_call_operand.hbm [shape: f32[2,8,256], index: 0, kind: input, shape index: {}]   ;;  %s1501_s1 = inlined_call_operand.vmem [shape: f32[8,72], index: 1, kind: input, shape index: {}]   ;;  %s1502_s2 = inlined_call_operand.vmem [shape: f32[8,1], index: 2, kind: input, shape index: {}]   ;;  %s1503_s3 = inlined_call_operand.vmem [shape: f32[8,72], index: 3, kind: input, shape index: {}]   ;;  %s1504_s4 = inlined_call_operand.vmem [shape: f32[8,1], index: 4, kind: input, shape index: {}]   ;;  %s1505_s5 = inlined_call_operand.hbm [shape: f32[2,8,256], index: 5, kind: output, shape index: {}]  }
   0x1   :  { %12 = vsyncpa [#allocation3 + $0x1], 0 }
   0x2   :  { %13 = vsyncpa [#allocation4], 0 }
   0x3   :  { %15 = vsyncpa [#allocation4 + $0x1], 0  ;;  %s1072_s18 = smov 0   ;;  %s1074_s19 = smov 0  }
   0x4   :  { %s1076_s20 = smov 0   ;;  %s1078_s21 = smov 0  }
   0x5 LB: > { %s1093_s22 = sadd.s32 4294967295, %s1027_s21   ;;  %s708_s23 = sadd.s32 4294967294, %s1027_s21   ;;  %s1027_s21 = sphi %s1078_s21, %s1571_s21   ;;  %s1023_s20 = sphi %s1076_s20, %s1570_s20   ;;  %s1019_s19 = sphi %s1074_s19, %s1569_s19   ;;  %s1015_s18 = sphi %s1072_s18, %s1568_s18  }
   0x6   : > { %s1097_s24 = sadd.s32 1, %s1027_s21   ;;  %s28_s25 = sadd.s32 1, %s1023_s20 }
   0x7   : > { %s25_s26 = ssub.s32 %s1027_s21, %s1097_s24  ;;  %p35_p0 = scmp.ne.s32.totalorder %s1023_s20, %s1019_s19 }
   0x8   : > { %p26_p1 = scmp.eq.s32.totalorder %s25_s26, 0  ;;  %p36_p2 = scmp.eq.s32.totalorder %s1027_s21, 0 }
   0x9   : > { %p41_p3 = scmp.ne.s32.totalorder %s1019_s19, %s1015_s18  ;;  %p42_p4 = scmp.eq.s32.totalorder %s1093_s22, 0 }
   0xa   : > { %s1109_s27 = scalar_select %p26_p1, %s1023_s20, %s28_s25  }
   0xb   : > { %p1111_p5 = por %p36_p2, %p35_p0  ;;  %p1115_p6 = por %p42_p4, %p41_p3 }
   0xc   : > { %p149_p7 = scmp.eq.s32.totalorder %s1093_s22, 1  ;;  %p155_p8 = scmp.eq.s32.totalorder %s708_s23, 1 }
   0xd   : > { %p814_p10 = scmp.lt.s32.totalorder %s1027_s21, 2  ;;  %s187_s7 = sand.u32 1, %s1023_s20  }
   0xe   : > { %p1122_p11 = por %p149_p7, %p35_p0  ;;  %p1126_p12 = por %p155_p8, %p41_p3 }
   0xf   : > { %s752_s8 = sshll.u32 %s1027_s21, 8  ;;  %s711_s9 = sshll.u32 %s187_s7, 4 }
  0x10   : > { %s1519_s30 = scalar_select %p1122_p11, 1, 0 }
  0x11   : > { %s1520_s6 = scalar_select %p1126_p12, 1, 0 }
  0x12   : > { %s1135_s12 = scalar_lea.hbm %s1500_s0, %s752_s8  ;;  %s191_s13 = scalar_lea.vmem [#allocation2], %s711_s9 }
  0x13   : > { %s199_s14 = sshll.u32 %s191_s13, 4  ;;  %p1139_p13 = pnand %p814_p10, %p1111_p5  ;;  %s1143_s14 = int_to_ptr.vmem [resolvable:$true] %s199_s14 }
  0x14   : > { %s188_s16 = scalar_lea.sflag [#allocation3], %s187_s7  ;;  %s931_s17 = scalar_lea.hbm %s1135_s12, 256 }
  0x15   : > { %p932_p2 = scmp.ne.s32.totalorder %s1135_s12, %s931_s17  ;;  %p933_p3 = pneg %p1139_p13 }
  0x16   : > { %s936_s26 = scalar_lea.hbm %s1500_s0, 512  ;;  %p937_p5 = scmp.lt.u32.totalorder %s1135_s12, %s1500_s0 }
  0x17   : > { %p934_p4 = pnand %p933_p3, %p932_p2  ;;  %p938_p8 = scmp.lt.u32.totalorder %s936_s26, %s931_s17 }
  0x18   : > { %p940_p9 = scmp.lt.u32.totalorder %s931_s17, %s1135_s12 }
  0x19   : > { %p935_p7 = pneg %p934_p4  ;;  %p939_p10 = por %p938_p8, %p937_p5 }
  0x1b   : > { %p941_p0 = por %p940_p9, %p939_p10 }
  0x1d   : > { %p942_p1 = pnand %p941_p0, %p935_p7 }
  0x1f   : > { %945 = shalt.err (!%p942_p1)
}
  0x20   : > { %s946_s7 = scalar_lea.vmem %s1143_s14, 256  ;;  %s1029_s9 = smov [#allocation2]  }
  0x21   : > { %p947_p2 = scmp.ne.s32.totalorder %s1143_s14, %s946_s7  ;;  %s951_s10 = sshll.u32 %s1029_s9, 4  ;;  %s952_s10 = int_to_ptr.vmem [resolvable:$false] %s951_s10 }
  0x22   : > { %s953_s11 = scalar_lea.vmem %s952_s10, 512  ;;  %p954_p11 = scmp.lt.s32.totalorder %s1143_s14, %s952_s10 }
  0x23   : > { %p949_p4 = pnand %p947_p2, %p933_p3  ;;  %p955_p5 = scmp.lt.s32.totalorder %s953_s11, %s946_s7 }
  0x25   : > { %p950_p12 = pneg %p949_p4  ;;  %p956_p8 = por %p955_p5, %p954_p11 }
  0x27   : > { %p957_p9 = pnand %p956_p8, %p950_p12 }
  0x29   : > { %960 = shalt.err (!%p957_p9)
}
  0x2a   : > { %809 = dma.hbm_to_vmem [thread:$0]  (!%p1139_p13), %s1135_s12, 256, %s1143_s14, %s188_s16  }
  0x2b   : > { %p1522_p0 = scmp.lt.s32.totalorder %s1027_s21, 3  ;;  %p1523_p1 = scmp.ge.s32.totalorder %s1027_s21, 1 }
  0x2d   : > { %p205_p3 = pnand %p1523_p1, %p1522_p0 }
  0x2e   : > { %s1177_s13 = sand.u32 (!%p205_p3), 1, %s1019_s19  }
  0x2f   : > { %208 = sbr.rel (%p205_p3) target bundleno = 788 (0x314), region = 40  ;;  %s715_s17 = sshll.u32 (!%p205_p3), %s1177_s13, 4 }
  0x30   : > { %s211_s23 = scalar_lea.sflag (!%p205_p3), [#allocation3], %s1177_s13  ;;  %s214_s15 = scalar_lea.vmem (!%p205_p3), [#allocation2], %s715_s17 }
  0x36   : > { %1006 = dma.done.wait (%p1115_p6), %s211_s23, 256  }
  0x37   : > { %1008 = vsyncadd (%p1115_p6), %s211_s23, 4294967040  ;;  %v1187_v0 = vld [vmem:[%s214_s15] sm:$0xff]  ;;  %v1189_v1 = vld [vmem:[%s214_s15 + $0x8] sm:$0xff]  ;;  %s1030_s12 = smov 15   ;;  %s1031_s14 = smov 17   ;;  %v1038_v3 = vmov 0.0   ;;  %v241_v6 = vlaneseq }
  0x38   : > { %v869_v2 = vpack.i.bf16 %v1189_v1, %v1187_v0  ;;  %s1032_s16 = smov 1   ;;  %s1033_s25 = smov 16   ;;  %465 = vmatprep.mubr.f32.mxu0 %v1038_v3  ;;  %612 = vmatprep.mubr.f32.mxu1 %v1038_v3  ;;  %v391_v4 = vld [vmem:[%s1502_s2] sm:$0xff]  ;;  %v1039_v5 = vmov 0   ;;  %vm1040_vm11 = vmmov 1  }
  0x39   : > { %s1034_s29 = smov 127   ;;  %s1035_s26 = smov 113   ;;  %894 = vset.pattern.permute.xlu1 %v1039_v5  ;;  %930 = vset.pattern.permute.xlu0 %v1039_v5  ;;  %v1207_v7 = vand.u32 127, %v241_v6  ;;  %v390_v6 = vld [vmem:[%s1501_s1] sm:$0xff] }
  0x3a   : > { %870 = vrot.lane.b32.xlu1 %v869_v2, %s1030_s12  ;;  %860 = vrot.lane.b32.xlu0 %v869_v2, %s1031_s14  ;;  %s1036_s28 = smov 112   ;;  %s1037_s8 = smov 111   ;;  %v538_v61 = vld [vmem:[%s1503_s3] sm:$0xff] }
  0x3b   : > { %v1210_v8 = vadd.s32 128, %v1207_v7  ;;  %v248_v9 = vand.u32 15, %v1207_v7  ;;  %vm268_vm0 = vcmp.ge.s32.totalorder %v1207_v7, 16  ;;  %vm1507_vm2 = vcmp.lt.s32.totalorder %v1207_v7, 15  ;;  %s624_s7 = scalar_lea.sflag [#allocation4], %s1177_s13  ;;  %p1565_p11 = scmp.ne.s32.totalorder %s1519_s30, 0 }
  0x3c   : > { %vm1508_vm3 = vcmp.lt.s32.totalorder %v1207_v7, 1  ;;  %vm322_vm4 = vcmp.lt.s32.totalorder %v1207_v7, 17  ;;  %vm1511_vm7 = vcmp.lt.s32.totalorder %v1207_v7, 16  ;;  %vm1509_vm13 = vcmp.lt.s32.totalorder %v1207_v7, 127 }
  0x3d   : > { %v255_v12 = vand.u32 15, %v1210_v8  ;;  %vm1215_vm1 = vcmp.ge.s32.totalorder %v248_v9, 1  ;;  %vm1245_vm10 = vcmp.le.s32.totalorder %v248_v9, 14 }
  0x3e   : > { %875 = vrot.lane.b32.xlu1 %v869_v2, %s1032_s16  ;;  %865 = vrot.lane.b32.xlu0 %v869_v2, %s1033_s25  ;;  %vm272_vm5 = vmand %vm268_vm0, %vm1215_vm1 }
  0x3f   : > { %vm1226_vm6 = vcmp.ge.s32.totalorder %v255_v12, 1  ;;  %vm1231_vm8 = vcmp.le.s32.totalorder %v255_v12, 14  ;;  %vm1241_vm9 = vmpackc.low %vm268_vm0, %vm272_vm5  ;;  %vm1514_vm5 = vcmp.lt.s32.totalorder %v1207_v7, 113 }
  0x40   : > { %vm1256_vm12 = vmpackc.low %vm1040_vm11, %vm1226_vm6 }
  0x41   : > { %vm1510_vm14 = vmpackc.low %vm1226_vm6, %vm1231_vm8 }
  0x42   : > { %880 = vrot.lane.b32.xlu0 %v869_v2, %s1034_s29  ;;  %885 = vrot.lane.b32.xlu1 %v869_v2, %s1035_s26  ;;  %vm1273_vm15 = vmand %vm268_vm0, %vm1245_vm10  ;;  %vm299_vm0 = vcmp.lt.s32.totalorder %v1210_v8, 240 }
  0x46   : > { %890 = vrot.lane.b32.xlu0 %v869_v2, %s1036_s28  ;;  %381 = vrot.lane.b32.xlu1 %v1187_v0, %s1037_s8 }
  0x4a   : > { %383 = vrot.lane.b32.xlu0 %v1189_v1, %s1037_s8  ;;  %394 = vperm.xlu1 %894, %v391_v4  }
  0xac   : > { %v871_v10 = vpop.permute.xlu1 %870  ;;  %v861_v11 = vpop.permute.xlu0 %860 }
  0xad   : > { %v873_v14 = vunpack.i.h.bf16 %v871_v10  ;;  %v872_v15 = vunpack.i.l.bf16 %v871_v10  ;;  %v863_v16 = vunpack.i.h.bf16 %v861_v11  ;;  %v862_v17 = vunpack.i.l.bf16 %v861_v11 }
  0xaf   : > { %v341_v26 = vsel %vm1507_vm2, %v872_v15, %v873_v14  ;;  %v323_v27 = vsel %vm322_vm4, %v862_v17, %v863_v16  ;;  %v324_v33 = vsel %vm322_vm4, %v863_v16, %v862_v17  ;;  %v342_v44 = vsel %vm1507_vm2, %v873_v14, %v872_v15  ;;  %vm1512_vm2 = vmpackc.low %vm1215_vm1, %vm1273_vm15  ;;  %v539_v17 = vld [vmem:[%s1504_s4] sm:$0xff] }
  0xb0   : > { %v876_v18 = vpop.permute.xlu1 %875  ;;  %v866_v19 = vpop.permute.xlu0 %865 }
  0xb1   : > { %v878_v22 = vunpack.i.h.bf16 %v876_v18  ;;  %v877_v23 = vunpack.i.l.bf16 %v876_v18  ;;  %v868_v24 = vunpack.i.h.bf16 %v866_v19  ;;  %v867_v25 = vunpack.i.l.bf16 %v866_v19 }
  0xb3   : > { %v350_v30 = vsel %vm1508_vm3, %v877_v23, %v878_v22  ;;  %v332_v31 = vsel %vm1511_vm7, %v867_v25, %v868_v24  ;;  %v333_v34 = vsel %vm1511_vm7, %v868_v24, %v867_v25  ;;  %v351_v45 = vsel %vm1508_vm3, %v878_v22, %v877_v23  ;;  %vm1332_vm7 = vmpackc.low %vm1245_vm10, %vm1040_vm11 }
  0xb4   : > { %v754_v35 = vpack.c.bf16 %v332_v31, %v323_v27  ;;  %v757_v36 = vpack.c.bf16 %v333_v34, %v324_v33  ;;  %v881_v37 = vpop.permute.xlu0 %880  ;;  %v886_v38 = vpop.permute.xlu1 %885  ;;  %v760_v46 = vpack.c.bf16 %v350_v30, %v341_v26  ;;  %vm1513_vm3 = vcmp.lt.s32.totalorder %v1207_v7, 112 }
  0xb5   : > { %v883_v39 = vunpack.i.h.bf16 %v881_v37  ;;  %v882_v40 = vunpack.i.l.bf16 %v881_v37  ;;  %v888_v42 = vunpack.i.h.bf16 %v886_v38  ;;  %v887_v43 = vunpack.i.l.bf16 %v886_v38 }
  0xb6   : > { %756 = vmatprep.subr.msk.bf16.mxu0 %vm1256_vm12, %v754_v35  ;;  %v763_v51 = vpack.c.bf16 %v351_v45, %v342_v44 }
  0xb7   : > { %759 = vmatpush1.bf16.msk.msra.mxu0 %vm1241_vm9, %v757_v36  ;;  %v360_v47 = vsel %vm1509_vm13, %v883_v39, %v882_v40  ;;  %v359_v48 = vsel %vm1509_vm13, %v882_v40, %v883_v39  ;;  %v369_v52 = vsel %vm1514_vm5, %v888_v42, %v887_v43  ;;  %vm1307_vm13 = vmpackc.low %vm1231_vm8, %vm1040_vm11  ;;  %v368_v58 = vsel %vm1514_vm5, %v887_v43, %v888_v42 }
  0xb8   : > { %v766_v49 = vpack.c.bf16 %v360_v47, %v1189_v1  ;;  %762 = vmatprep.subr.msk.bf16.mxu0 %vm1510_vm14, %v760_v46  ;;  %v891_v50 = vpop.permute.xlu0 %890  ;;  %vm301_vm14 = vmand %vm299_vm0, %vm1226_vm6  ;;  %v769_v56 = vpack.c.bf16 %v359_v48, %v1187_v0  ;;  %v382_v63 = vpop.permute.xlu1 %381 }
  0xb9   : > { %v893_v53 = vunpack.i.h.bf16 %v891_v50  ;;  %v892_v54 = vunpack.i.l.bf16 %v891_v50  ;;  %vm1350_vm5 = vmpackc.low %vm1040_vm11, %vm1215_vm1  ;;  %vm1515_vm11 = vcmask 588800  }
  0xbb   : > { %765 = vmatpush1.bf16.msk.msra.mxu0 %vm1512_vm2, %v763_v51  ;;  %v378_v57 = vsel %vm1513_vm3, %v893_v53, %v892_v54  ;;  %v377_v59 = vsel %vm1513_vm3, %v892_v54, %v893_v53  ;;  %vm1338_vm2 = vmpackc.low %vm299_vm0, %vm301_vm14  ;;  %vm1516_vm3 = vcmp.lt.s32.totalorder %v1207_v7, 111 }
  0xbc   : > { %v772_v60 = vpack.c.bf16 %v378_v57, %v369_v52  ;;  %768 = vmatprep.subr.msk.bf16.mxu0 %vm1307_vm13, %v766_v49  ;;  %v384_v0 = vpop.permute.xlu0 %383  ;;  %v775_v1 = vpack.c.bf16 %v377_v59, %v368_v58  ;;  %vm1360_vm14 = vmand %vm299_vm0, %vm1231_vm8  ;;  %vm1548_vm0 = vcmp.lt.s32.totalorder %v1207_v7, 16 }
  0xbd   : > { %v387_v3 = vsel %vm1516_vm3, %v384_v0, %v382_v63  ;;  %v386_v5 = vsel %vm1516_vm3, %v382_v63, %v384_v0  ;;  %vm1550_vm3 = vcmp.lt.s32.totalorder %v1207_v7, 1 }
  0xbf   : > { %771 = vmatpush1.bf16.msk.msra.mxu0 %vm1332_vm7, %v769_v56 }
  0xc0   : > { %774 = vmatprep.subr.msk.bf16.mxu0 %vm1338_vm2, %v772_v60 }
  0xc3   : > { %777 = vmatpush1.bf16.msk.msra.mxu0 %vm1350_vm5, %v775_v1 }
  0xc4   : > { %729 = vmatprep.subr.msk.mxu0 %vm1360_vm14, %v387_v3 }
  0xc7   : > { %730 = vmatpush1.msk.msra.mxu0 %vm1245_vm10, %v386_v5 }
  0xc8   : > { %731 = vmatmul.mubr.msk.f32.vlgmr.msra.gmra.mrb[0].mxu0 %vm1515_vm11, %v390_v6  ;;  %vm1549_vm11 = vmmov %vm1548_vm0 }
  0xc9   : > { %v395_v8 = vpop.permute.xlu1 %394 }
 0x19b   : > { %v467_v9 = vpop.f32.mrb[0].mxu0 }
 0x19c   : > { %v468_v10 = vadd.f32 %v467_v9, %v395_v8  ;;  %v469_v11 = vpop.f32.mrb[1].mxu0 }
 0x19d   : > { %v470_v12 = vadd.f32 %v469_v11, %v395_v8 }
 0x19e   : > { %v472_v14 = vmax.f32 %v468_v10, 0.0 }
 0x19f   : > { %v473_v15 = vmax.f32 %v470_v12, 0.0 }
 0x1a1   : > { %v900_v16 = vpack.i.bf16 %v473_v15, %v472_v14 }
 0x1a3   : > { %901 = vrot.lane.b32.xlu1 %v900_v16, %s1033_s25  ;;  %896 = vrot.lane.b32.xlu0 %v900_v16, %s1031_s14  ;;  %s240_s25 = scalar_lea.vmem [#allocation5], %s715_s17  ;;  %s1041_s17 = smov [#allocation5]  }
 0x1a4   : > { %s965_s9 = sshll.u32 %s1041_s17, 4  ;;  %s966_s9 = int_to_ptr.vmem [resolvable:$false] %s965_s9 }
 0x1a5   : > { %s967_s10 = scalar_lea.vmem %s966_s9, 512 }
 0x1a7   : > { %911 = vrot.lane.b32.xlu1 %v900_v16, %s1032_s16  ;;  %906 = vrot.lane.b32.xlu0 %v900_v16, %s1030_s12  ;;  %s753_s16 = sshll.u32 %s1093_s22, 8 }
 0x1ab   : > { %921 = vrot.lane.b32.xlu1 %v900_v16, %s1035_s26  ;;  %916 = vrot.lane.b32.xlu0 %v900_v16, %s1034_s29  ;;  %s638_s29 = sshll.u32 %s240_s25, 4  ;;  %s1458_s29 = int_to_ptr.vmem [resolvable:$true] %s638_s29 }
 0x1ac   : > { %s961_s22 = scalar_lea.vmem %s1458_s29, 256  ;;  %p968_p7 = scmp.lt.s32.totalorder %s1458_s29, %s966_s9 }
 0x1ad   : > { %p962_p6 = scmp.ne.s32.totalorder %s1458_s29, %s961_s22  ;;  %p969_p10 = scmp.lt.s32.totalorder %s967_s10, %s961_s22 }
 0x1af   : > { %530 = vrot.lane.b32.xlu1 %v472_v14, %s1037_s8  ;;  %926 = vrot.lane.b32.xlu0 %v900_v16, %s1036_s28  ;;  %p963_p12 = pnand %p962_p6, %p1565_p11  ;;  %p970_p2 = por %p969_p10, %p968_p7 }
 0x1b1   : > { %p964_p13 = pneg %p963_p12 }
 0x1b3   : > { %542 = vperm.xlu1 %894, %v539_v17   ;;  %532 = vrot.lane.b32.xlu0 %v473_v15, %s1037_s8  ;;  %s1456_s8 = scalar_lea.hbm %s1505_s5, %s753_s16  ;;  %p971_p4 = pnand %p970_p2, %p964_p13 }
 0x215   : > { %v902_v18 = vpop.permute.xlu1 %901  ;;  %v897_v19 = vpop.permute.xlu0 %896 }
 0x216   : > { %v904_v22 = vunpack.i.h.bf16 %v902_v18  ;;  %v903_v23 = vunpack.i.l.bf16 %v902_v18  ;;  %v899_v24 = vunpack.i.h.bf16 %v897_v19  ;;  %v898_v25 = vunpack.i.l.bf16 %v897_v19 }
 0x218   : > { %v478_v26 = vsel %vm322_vm4, %v898_v25, %v899_v24  ;;  %v486_v27 = vsel %vm1548_vm0, %v903_v23, %v904_v22  ;;  %v479_v30 = vsel %vm322_vm4, %v899_v24, %v898_v25  ;;  %v487_v31 = vsel %vm1549_vm11, %v904_v22, %v903_v23  ;;  %vm1551_vm0 = vmmov %vm1550_vm3 }
 0x219   : > { %v912_v33 = vpop.permute.xlu1 %911  ;;  %v907_v34 = vpop.permute.xlu0 %906  ;;  %v778_v35 = vpack.c.bf16 %v486_v27, %v478_v26  ;;  %v781_v36 = vpack.c.bf16 %v487_v31, %v479_v30  ;;  %vm1552_vm4 = vcmp.lt.s32.totalorder %v1207_v7, 15 }
 0x21a   : > { %v914_v37 = vunpack.i.h.bf16 %v912_v33  ;;  %v913_v38 = vunpack.i.l.bf16 %v912_v33  ;;  %v909_v39 = vunpack.i.h.bf16 %v907_v34  ;;  %v908_v40 = vunpack.i.l.bf16 %v907_v34  ;;  %vm1553_vm11 = vmmov %vm1552_vm4 }
 0x21b   : > { %780 = vmatprep.subr.msk.bf16.mxu1 %vm1256_vm12, %v778_v35  ;;  %vm1555_vm12 = vcmp.lt.s32.totalorder %v1207_v7, 127 }
 0x21c   : > { %v502_v42 = vsel %vm1550_vm3, %v913_v38, %v914_v37  ;;  %v503_v43 = vsel %vm1551_vm0, %v914_v37, %v913_v38  ;;  %v494_v44 = vsel %vm1552_vm4, %v908_v40, %v909_v39  ;;  %v495_v45 = vsel %vm1553_vm11, %v909_v39, %v908_v40  ;;  %783 = vmatpush1.bf16.msk.msra.mxu1 %vm1241_vm9, %v781_v36  ;;  %vm1554_vm3 = vmpackc.low %vm1226_vm6, %vm1231_vm8 }
 0x21d   : > { %v784_v46 = vpack.c.bf16 %v502_v42, %v494_v44  ;;  %v787_v47 = vpack.c.bf16 %v503_v43, %v495_v45  ;;  %v922_v48 = vpop.permute.xlu1 %921  ;;  %v917_v32 = vpop.permute.xlu0 %916  ;;  %vm1556_vm0 = vmmov %vm1555_vm12  ;;  %vm1558_vm6 = vcmp.lt.s32.totalorder %v1207_v7, 113  ;;  %vm1560_vm4 = vcmp.lt.s32.totalorder %v1207_v7, 112 }
 0x21e   : > { %v919_v49 = vunpack.i.h.bf16 %v917_v32  ;;  %v918_v50 = vunpack.i.l.bf16 %v917_v32  ;;  %v924_v51 = vunpack.i.h.bf16 %v922_v48  ;;  %v923_v52 = vunpack.i.l.bf16 %v922_v48  ;;  %vm1557_vm9 = vmpackc.low %vm1215_vm1, %vm1273_vm15 }
 0x21f   : > { %786 = vmatprep.subr.msk.bf16.mxu1 %vm1554_vm3, %v784_v46  ;;  %vm1559_vm8 = vmmov %vm1558_vm6 }
 0x220   : > { %v510_v53 = vsel %vm1555_vm12, %v918_v50, %v919_v49  ;;  %v511_v28 = vsel %vm1556_vm0, %v919_v49, %v918_v50  ;;  %789 = vmatpush1.bf16.msk.msra.mxu1 %vm1557_vm9, %v787_v47  ;;  %v518_v58 = vsel %vm1558_vm6, %v923_v52, %v924_v51  ;;  %v519_v59 = vsel %vm1559_vm8, %v924_v51, %v923_v52  ;;  %vm1561_vm1 = vmmov %vm1560_vm4 }
 0x221   : > { %v790_v54 = vpack.c.bf16 %v511_v28, %v473_v15  ;;  %v793_v20 = vpack.c.bf16 %v510_v53, %v472_v14  ;;  %v927_v56 = vpop.permute.xlu0 %926  ;;  %v531_v0 = vpop.permute.xlu1 %530 }
 0x222   : > { %v929_v21 = vunpack.i.h.bf16 %v927_v56  ;;  %v928_v57 = vunpack.i.l.bf16 %v927_v56 }
 0x223   : > { %792 = vmatprep.subr.msk.bf16.mxu1 %vm1307_vm13, %v790_v54  ;;  %vm1562_vm13 = vcmp.lt.s32.totalorder %v1207_v7, 111 }
 0x224   : > { %v526_v13 = vsel %vm1560_vm4, %v928_v57, %v929_v21  ;;  %v527_v41 = vsel %vm1561_vm1, %v929_v21, %v928_v57  ;;  %795 = vmatpush1.bf16.msk.msra.mxu1 %vm1332_vm7, %v793_v20  ;;  %vm1563_vm7 = vmmov %vm1562_vm13 }
 0x225   : > { %v796_v60 = vpack.c.bf16 %v527_v41, %v519_v59  ;;  %v799_v63 = vpack.c.bf16 %v526_v13, %v518_v58  ;;  %v533_v55 = vpop.permute.xlu0 %532 }
 0x226   : > { %v535_v1 = vsel %vm1562_vm13, %v533_v55, %v531_v0  ;;  %v534_v3 = vsel %vm1563_vm7, %v531_v0, %v533_v55 }
 0x227   : > { %798 = vmatprep.subr.msk.bf16.mxu1 %vm1338_vm2, %v796_v60  ;;  %vm1564_vm2 = vcmask 588800  }
 0x228   : > { %801 = vmatpush1.bf16.msk.msra.mxu1 %vm1350_vm5, %v799_v63 }
 0x229   : > { %744 = vmatprep.subr.msk.mxu1 %vm1360_vm14, %v535_v1 }
 0x22c   : > { %745 = vmatpush1.msk.msra.mxu1 %vm1245_vm10, %v534_v3 }
 0x22d   : > { %746 = vmatmul.mubr.msk.f32.vlgmr.msra.gmra.mrb[0].mxu1 %vm1564_vm2, %v538_v61 }
 0x232   : > { %v543_v62 = vpop.permute.xlu1 %542 }
 0x300   : > { %v614_v5 = vpop.f32.mrb[0].mxu1 }
 0x301   : > { %v615_v2 = vadd.f32 %v614_v5, %v543_v62  ;;  %v616_v6 = vpop.f32.mrb[1].mxu1 }
 0x302   : > { %v617_v4 = vadd.f32 %v616_v6, %v543_v62 }
 0x303   : > { %v619_v8 = vmax.f32 %v615_v2, 0.0 }
 0x304   : > { %v620_v9 = vmax.f32 %v617_v4, 0.0 }
 0x305   : > { %621 = vst [vmem:[%s240_s25] sm:$0xff] %v619_v8 }
 0x306   : > { %622 = vst [vmem:[%s240_s25 + $0x8] sm:$0xff] %v620_v9 }
 0x307   : > { %974 = shalt.err (!%p971_p4)
}
 0x308   : > { %s975_s13 = scalar_lea.hbm %s1456_s8, 256  ;;  %s979_s15 = scalar_lea.hbm %s1505_s5, 512 }
 0x309   : > { %p976_p5 = scmp.ne.s32.totalorder %s1456_s8, %s975_s13  ;;  %p980_p0 = scmp.lt.u32.totalorder %s1456_s8, %s1505_s5 }
 0x30a   : > { %p981_p1 = scmp.lt.u32.totalorder %s979_s15, %s975_s13  ;;  %p983_p6 = scmp.lt.u32.totalorder %s975_s13, %s1456_s8 }
 0x30b   : > { %p977_p8 = pnand %p976_p5, %p1565_p11 }
 0x30c   : > { %p982_p3 = por %p981_p1, %p980_p0 }
 0x30d   : > { %p978_p9 = pneg %p977_p8 }
 0x30e   : > { %p984_p12 = por %p983_p6, %p982_p3 }
 0x310   : > { %p985_p13 = pnand %p984_p12, %p978_p9 }
 0x312   : > { %988 = shalt.err (!%p985_p13)
}
 0x313   : > { %804 = dma.vmem_to_hbm [thread:$0]  (%p1565_p11), %s1458_s29, 256, %s1456_s8, %s624_s7  }
 0x314 PF: > { %s650_s16 = sand.u32 1, %s1015_s18   ;;  %p1566_p7 = scmp.ne.s32.totalorder %s1520_s6, 0 }
 0x315   : > { %p1567_p10 = scmp.ge.s32.totalorder %s1027_s21, 2  ;;  %s651_s25 = scalar_lea.sflag [#allocation4], %s650_s16 }
 0x317   : > { %p811_p2 = pnand %p1567_p10, %p1566_p7 }
 0x319   : > { %1010 = dma.done.wait (!%p811_p2), %s651_s25, 256  }
 0x31a   : > { %1012 = vsyncadd (!%p811_p2), %s651_s25, 4294967040  ;;  %p18_p4 = scmp.ge.s32.totalorder %s1097_s24, 4   ;;  %s1568_s18 = smov %s1019_s19 }
 0x31b   : > { %s1569_s19 = smov %s1023_s20  ;;  %s1570_s20 = smov %s1109_s27 }
 0x31c   : > { %s1571_s21 = smov %s1097_s24  ;;  %20 = sbr.rel (!%p18_p4) target bundleno = 5 (0x5), region = 85 }
 0x323   :  { %656 = vsyncpa [#allocation3], 1 }
 0x324   :  { %658 = vsyncpa [#allocation3 + $0x1], 1 }
 0x325   :  { %659 = vsyncpa [#allocation4], 1 }
 0x326   :  { %661 = vsyncpa [#allocation4 + $0x1], 1 }

</bundles_post_ra>
